<compile_context>
chip_gen: v5e
topology: v5e:2x2
jax: 0.10.0
libtpu: 0.0.40
codegen_flags: <defaults>
</compile_context>

<pallas_src>
import jax
import jax.numpy as jnp
from jax.experimental import pallas as pl
from jax.experimental.pallas import tpu as pltpu

_HIDDEN = (256, 128, 64, 32)
_LN_EPS = 1e-5


def _row_stats(r, eps=_LN_EPS):
    """Per-row LayerNorm stats, one pass: both cross-lane reductions are issued
    from r directly so the two XLU reduces don't serialize."""
    n = r.shape[-1]
    s1 = jnp.sum(r, axis=-1, keepdims=True)
    s2 = jnp.sum(r * r, axis=-1, keepdims=True)
    mu = s1 / n
    var = jnp.maximum(s2 / n - mu * mu, 0.0)
    return mu, jax.lax.rsqrt(var + eps)


def _deepfm_kernel(x_ref, cw_ref, cb_ref,
                   w1_ref, b1_ref,
                   w2_ref, b2_ref, cs2_ref,
                   w3_ref, b3_ref, cs3_ref,
                   w4_ref, b4_ref, cs4_ref,
                   woA_ref, woB_ref, wsum_ref, bo_ref,
                   out_ref):
    f32, bf16 = jnp.float32, jnp.bfloat16
    x = x_ref[...]                                    # [TM, D] f32, D = true feature dim

    # ---- CrossLayer (3 iterations), f32 on the VPU/XLU ----
    # PyTorch forms x_0 x_l^T then right-multiplies by W[i]; algebraically:
    #   x_{l+1} = x_0 * (x_l . w_i) + b_i + x_l      (per-sample scalar dot)
    x0 = x
    xl = x
    for i in range(3):
        w = cw_ref[i:i + 1, :]                        # [1, D]
        b = cb_ref[i:i + 1, :]
        s = jnp.sum(xl * w, axis=-1, keepdims=True)   # [TM, 1]
        xl = x0 * s + b + xl

    # ---- DNN tower: bf16 MXU matmuls, f32 accumulation ----
    # LayerNorm of layer k is folded into layer k+1's matmul epilogue:
    #   ((r - mu)*inv) @ W == inv * (r @ W - mu * colsum(W))
    # TODO(synk): nn.Dropout layers are identity here (inference semantics).
    r = jnp.maximum(
        jnp.dot(x.astype(bf16), w1_ref[...], preferred_element_type=f32)
        + b1_ref[...], 0.0)                           # [TM, 256]

    for w_ref, b_ref, cs_ref in ((w2_ref, b2_ref, cs2_ref),
                                 (w3_ref, b3_ref, cs3_ref),
                                 (w4_ref, b4_ref, cs4_ref)):
        mu, inv = _row_stats(r)
        pre = inv * (jnp.dot(r.astype(bf16), w_ref[...],
                             preferred_element_type=f32)
                     - mu * cs_ref[...]) + b_ref[...]
        r = jnp.maximum(pre, 0.0)                     # [TM, 128] -> [TM, 64] -> [TM, 32]

    mu4, inv4 = _row_stats(r)
    h = (r - mu4) * inv4                              # last tower LN, width 32 (cheap)

    # ---- joint LayerNorm over [cross(D) | dnn(32)] + Linear(->1), folded ----
    n = float(x.shape[-1] + h.shape[-1])
    s1 = jnp.sum(xl, axis=-1, keepdims=True) + jnp.sum(h, axis=-1, keepdims=True)
    s2 = (jnp.sum(xl * xl, axis=-1, keepdims=True)
          + jnp.sum(h * h, axis=-1, keepdims=True))
    mu = s1 / n
    var = jnp.maximum(s2 / n - mu * mu, 0.0)
    inv = jax.lax.rsqrt(var + _LN_EPS)
    dotA = jnp.sum(xl * woA_ref[...], axis=-1, keepdims=True)
    dotB = jnp.sum(h * woB_ref[...], axis=-1, keepdims=True)
    logit = inv * (dotA + dotB - mu * wsum_ref[...]) + bo_ref[...]
    out_ref[...] = logit.astype(out_ref.dtype)        # [TM, 1]


def deepfm_pallas(x, p, *, block_m=1024):
    """x: [B, D] float32 (dense ++ flattened sparse embeddings). Returns [B, 1] logits."""
    B, D = x.shape
    f32, bf16 = jnp.float32, jnp.bfloat16

    def rup(v, m):
        return ((v + m - 1) // m) * m

    # Tile size: multiple of 8; aim for >= 2 batch tiles whenever B allows so the
    # "parallel" grid axis can be split across v7x's 2 TensorCores; never below 8.
    bm = max(8, min(int(block_m), rup(max(pl.cdiv(B, 2), 1), 8)))
    num_tiles = pl.cdiv(B, bm)

    w1 = p['w1'].astype(bf16)
    w2 = p['w2'].astype(bf16)
    w3 = p['w3'].astype(bf16)
    w4 = p['w4'].astype(bf16)
    # colsum of the *bf16* weights (in f32) so the folded-LN correction term
    # matches the MXU operand exactly.
    cs2 = jnp.sum(w2.astype(f32), axis=0, keepdims=True)     # [1, 128]
    cs3 = jnp.sum(w3.astype(f32), axis=0, keepdims=True)     # [1, 64]
    cs4 = jnp.sum(w4.astype(f32), axis=0, keepdims=True)     # [1, 32]
    woA = p['wo'][:D].reshape(1, D)                          # cross-slab head weights
    woB = p['wo'][D:].reshape(1, _HIDDEN[-1])                # dnn-slab head weights
    wsum = jnp.sum(p['wo']).reshape(1, 1)                    # sum of all head weights
    bo = p['bo'].reshape(1, 1)

    args = (x.astype(f32), p['cross_w'], p['cross_b'],
            w1, p['b1'], w2, p['b2'], cs2, w3, p['b3'], cs3,
            w4, p['b4'], cs4, woA, woB, wsum, bo)

    def resident(a):  # full-array block, constant index_map -> stays in VMEM
        nd = a.ndim
        return pl.BlockSpec(a.shape, lambda i, _nd=nd: (0,) * _nd)

    in_specs = ([pl.BlockSpec((bm, D), lambda i: (i, 0))]
                + [resident(a) for a in args[1:]])

    # VMEM budget derived from the actual footprint (double-buffered x/out
    # tiles, resident params, live f32 activation slabs), with 2x margin.
    weight_bytes = sum(int(a.size) * a.dtype.itemsize for a in args[1:])
    est = (2 * (bm * D * 4 + bm * 4)          # x / out tiles, double-buffered
           + 2 * weight_bytes                  # resident params (2 buffers each)
           + 8 * bm * max(_HIDDEN) * 4)        # live f32 activation slabs
    vmem_limit = int(min(32 << 20, max(16 << 20, 2 * est)))

    return pl.pallas_call(
        _deepfm_kernel,
        grid=(num_tiles,),
        in_specs=in_specs,
        out_specs=pl.BlockSpec((bm, 1), lambda i: (i, 0)),
        out_shape=jax.ShapeDtypeStruct((B, 1), jnp.float32),
        compiler_params=pltpu.CompilerParams(
            dimension_semantics=("parallel",),        # shard batch tiles on v7x's 2 TCs
            vmem_limit_bytes=vmem_limit),
    )(*args)


# ---------------- pure-JAX references (for correctness checks) ----------------
def _ln_ref(h, eps=_LN_EPS):
    mu = jnp.mean(h, axis=-1, keepdims=True)
    var = jnp.mean((h - mu) ** 2, axis=-1, keepdims=True)
    return (h - mu) * jax.lax.rsqrt(var + eps)


def deepfm_ref(x, p):
    """Pure-f32 module-semantics reference (two-pass LayerNorm, no folding)."""
    x0, xl = x, x
    for i in range(3):
        s = jnp.sum(xl * p['cross_w'][i][None, :], axis=-1, keepdims=True)
        xl = x0 * s + p['cross_b'][i][None, :] + xl
    h = x
    for wk, bk in (('w1', 'b1'), ('w2', 'b2'), ('w3', 'b3'), ('w4', 'b4')):
        h = _ln_ref(jnp.maximum(h @ p[wk] + p[bk], 0.0))
    cat = _ln_ref(jnp.concatenate([xl, h], axis=-1))
    return cat @ p['wo'] + p['bo']


def deepfm_mirror(x, p, *, matmul_dtype=jnp.bfloat16):
    """Pure-JAX mirror of the kernel's exact algebra: one-pass LN stats, LN
    folded into the next matmul's epilogue, folded joint-LN + linear head."""
    f32 = jnp.float32
    D = x.shape[-1]
    x0, xl = x, x
    for i in range(3):
        s = jnp.sum(xl * p['cross_w'][i][None, :], axis=-1, keepdims=True)
        xl = x0 * s + p['cross_b'][i][None, :] + xl

    ws = [p['w1'].astype(matmul_dtype), p['w2'].astype(matmul_dtype),
          p['w3'].astype(matmul_dtype), p['w4'].astype(matmul_dtype)]
    bs = [p['b1'], p['b2'], p['b3'], p['b4']]
    r = jnp.maximum(jnp.dot(x.astype(matmul_dtype), ws[0],
                            preferred_element_type=f32) + bs[0], 0.0)
    for w, b in zip(ws[1:], bs[1:]):
        mu, inv = _row_stats(r)
        cs = jnp.sum(w.astype(f32), axis=0, keepdims=True)
        pre = inv * (jnp.dot(r.astype(matmul_dtype), w,
                             preferred_element_type=f32) - mu * cs) + b
        r = jnp.maximum(pre, 0.0)
    mu4, inv4 = _row_stats(r)
    h = (r - mu4) * inv4

    n = float(D + h.shape[-1])
    s1 = jnp.sum(xl, -1, keepdims=True) + jnp.sum(h, -1, keepdims=True)
    s2 = jnp.sum(xl * xl, -1, keepdims=True) + jnp.sum(h * h, -1, keepdims=True)
    mu = s1 / n
    var = jnp.maximum(s2 / n - mu * mu, 0.0)
    inv = jax.lax.rsqrt(var + _LN_EPS)
    woA = p['wo'][:D].reshape(1, D)
    woB = p['wo'][D:].reshape(1, -1)
    dotA = jnp.sum(xl * woA, -1, keepdims=True)
    dotB = jnp.sum(h * woB, -1, keepdims=True)
    return inv * (dotA + dotB - mu * jnp.sum(p['wo'])) + p['bo']


# ---------------- parameter construction ----------------
def xavier_uniform(key, fan_in, fan_out):
    limit = (6.0 / (fan_in + fan_out)) ** 0.5
    return jax.random.uniform(key, (fan_in, fan_out), jnp.float32, -limit, limit)


def make_params(key, D):
    ks = jax.random.split(key, 8)
    p = {}
    p['cross_w'] = jax.random.normal(ks[0], (3, D), jnp.float32)   # torch.randn(D,1) x3
    p['cross_b'] = jnp.zeros((3, D), jnp.float32)
    dims = [D, *_HIDDEN]
    for li in range(4):
        p[f'w{li + 1}'] = xavier_uniform(ks[1 + li], dims[li], dims[li + 1])
        p[f'b{li + 1}'] = jnp.zeros((1, dims[li + 1]), jnp.float32)
    p['wo'] = xavier_uniform(ks[5], D + _HIDDEN[-1], 1)
    p['bo'] = jnp.zeros((1, 1), jnp.float32)
    return p


if __name__ == "__main__":
    key = jax.random.PRNGKey(0)
    B, dense_dim, sparse_dim, embed_dim = 2, 8, 4, 8
    vocab_sizes = [10, 20, 30, 40]
    D = dense_dim + sparse_dim * embed_dim            # 40

    k_dense, k_sparse, k_emb, k_param, k_big = jax.random.split(key, 5)
    dnn_dense_data = jax.random.normal(k_dense, (B, dense_dim), jnp.float32)
    dnn_sparse_data = jax.random.randint(
        k_sparse, (B, sparse_dim), 0, min(vocab_sizes), dtype=jnp.int32)

    # Embedding tables (xavier_uniform) — gather + concat in plain JAX glue.
    emb_keys = jax.random.split(k_emb, sparse_dim)
    emb_tables = [xavier_uniform(emb_keys[i], vocab_sizes[i], embed_dim)
                  for i in range(sparse_dim)]
    sparse = jnp.concatenate(
        [emb_tables[i][dnn_sparse_data[:, i]] for i in range(sparse_dim)], axis=1)
    x = jnp.concatenate([dnn_dense_data, sparse], axis=1)   # [B, D]

    params = make_params(k_param, D)

    out = deepfm_pallas(x, params)
    jax.block_until_ready(out)
    assert out.shape == (B, 1)

    # (1) Algebra check: the folded formulation in f32 equals the module math.
    alg = deepfm_mirror(x, params, matmul_dtype=jnp.float32)
    ref = deepfm_ref(x, params)
    assert jnp.allclose(alg, ref, rtol=1e-4, atol=1e-4), (alg, ref)

    # (2) Tight check: kernel vs. a reference mirroring its folded algebra + bf16 matmuls.
    mir = deepfm_mirror(x, params)
    assert jnp.allclose(out, mir, rtol=5e-3, atol=5e-3), (out, mir)

    # (3) Sanity bound vs. pure-f32 module math (deviation: bf16 matmul rounding
    #     interacting with the LN folding; the tight guarantees are (1)+(2)).
    assert jnp.allclose(out, ref, rtol=2e-1, atol=2e-1), (out, ref)

    # (4) Exercise the multi-tile grid and the ragged (masked) last batch tile.
    xb = jax.random.normal(k_big, (37, D), jnp.float32)
    outb = deepfm_pallas(xb, params, block_m=16)      # 3 tiles, last one ragged
    jax.block_until_ready(outb)
    assert outb.shape == (37, 1)
    mirb = deepfm_mirror(xb, params)
    assert jnp.allclose(outb, mirb, rtol=5e-3, atol=5e-3), (outb, mirb)

    print("KERNEL_OK")
</pallas_src>

<mosaic_0001>
module attributes {stable_mosaic.version = 11 : i64} {
  func.func @_deepfm_kernel(%arg0: i32, %arg1: memref<8x40xf32, #tpu.memory_space<vmem>>, %arg2: memref<3x40xf32, #tpu.memory_space<vmem>>, %arg3: memref<3x40xf32, #tpu.memory_space<vmem>>, %arg4: memref<40x256xbf16, #tpu.memory_space<vmem>>, %arg5: memref<1x256xf32, #tpu.memory_space<vmem>>, %arg6: memref<256x128xbf16, #tpu.memory_space<vmem>>, %arg7: memref<1x128xf32, #tpu.memory_space<vmem>>, %arg8: memref<1x128xf32, #tpu.memory_space<vmem>>, %arg9: memref<128x64xbf16, #tpu.memory_space<vmem>>, %arg10: memref<1x64xf32, #tpu.memory_space<vmem>>, %arg11: memref<1x64xf32, #tpu.memory_space<vmem>>, %arg12: memref<64x32xbf16, #tpu.memory_space<vmem>>, %arg13: memref<1x32xf32, #tpu.memory_space<vmem>>, %arg14: memref<1x32xf32, #tpu.memory_space<vmem>>, %arg15: memref<1x40xf32, #tpu.memory_space<vmem>>, %arg16: memref<1x32xf32, #tpu.memory_space<vmem>>, %arg17: memref<1x1xf32, #tpu.memory_space<vmem>>, %arg18: memref<1x1xf32, #tpu.memory_space<vmem>>, %arg19: memref<8x1xf32, #tpu.memory_space<vmem>>) attributes {dimension_semantics = [#tpu.dimension_semantics<parallel>], iteration_bounds = array<i64: 1>, scalar_prefetch = 0 : i64, scratch_operands = 0 : i64, tpu.core_type = #tpu.core_type<tc>, window_params = [{transform_indices = @transform_0, window_bounds = array<i64: 8, 40>}, {pipeline_mode = #tpu.pipeline_mode<synchronous>, transform_indices = @transform_1, window_bounds = array<i64: 3, 40>}, {pipeline_mode = #tpu.pipeline_mode<synchronous>, transform_indices = @transform_2, window_bounds = array<i64: 3, 40>}, {pipeline_mode = #tpu.pipeline_mode<synchronous>, transform_indices = @transform_3, window_bounds = array<i64: 40, 256>}, {pipeline_mode = #tpu.pipeline_mode<synchronous>, transform_indices = @transform_4, window_bounds = array<i64: 1, 256>}, {pipeline_mode = #tpu.pipeline_mode<synchronous>, transform_indices = @transform_5, window_bounds = array<i64: 256, 128>}, {pipeline_mode = #tpu.pipeline_mode<synchronous>, transform_indices = @transform_6, window_bounds = array<i64: 1, 128>}, {pipeline_mode = #tpu.pipeline_mode<synchronous>, transform_indices = @transform_7, window_bounds = array<i64: 1, 128>}, {pipeline_mode = #tpu.pipeline_mode<synchronous>, transform_indices = @transform_8, window_bounds = array<i64: 128, 64>}, {pipeline_mode = #tpu.pipeline_mode<synchronous>, transform_indices = @transform_9, window_bounds = array<i64: 1, 64>}, {pipeline_mode = #tpu.pipeline_mode<synchronous>, transform_indices = @transform_10, window_bounds = array<i64: 1, 64>}, {pipeline_mode = #tpu.pipeline_mode<synchronous>, transform_indices = @transform_11, window_bounds = array<i64: 64, 32>}, {pipeline_mode = #tpu.pipeline_mode<synchronous>, transform_indices = @transform_12, window_bounds = array<i64: 1, 32>}, {pipeline_mode = #tpu.pipeline_mode<synchronous>, transform_indices = @transform_13, window_bounds = array<i64: 1, 32>}, {pipeline_mode = #tpu.pipeline_mode<synchronous>, transform_indices = @transform_14, window_bounds = array<i64: 1, 40>}, {pipeline_mode = #tpu.pipeline_mode<synchronous>, transform_indices = @transform_15, window_bounds = array<i64: 1, 32>}, {pipeline_mode = #tpu.pipeline_mode<synchronous>, transform_indices = @transform_16, window_bounds = array<i64: 1, 1>}, {pipeline_mode = #tpu.pipeline_mode<synchronous>, transform_indices = @transform_17, window_bounds = array<i64: 1, 1>}, {transform_indices = @transform_18, window_bounds = array<i64: 8, 1>}]} {
    %c0 = arith.constant 0 : index
    %c0_0 = arith.constant 0 : index
    %0 = vector.load %arg1[%c0, %c0_0] : memref<8x40xf32, #tpu.memory_space<vmem>>, vector<8x40xf32>
    %c0_1 = arith.constant 0 : index
    %c0_2 = arith.constant 0 : index
    %1 = vector.load %arg2[%c0_1, %c0_2] : memref<3x40xf32, #tpu.memory_space<vmem>>, vector<1x40xf32>
    %c0_3 = arith.constant 0 : index
    %c0_4 = arith.constant 0 : index
    %2 = vector.load %arg3[%c0_3, %c0_4] : memref<3x40xf32, #tpu.memory_space<vmem>>, vector<1x40xf32>
    %3 = vector.broadcast %1 : vector<1x40xf32> to vector<8x40xf32>
    %4 = arith.mulf %0, %3 : vector<8x40xf32>
    %cst = arith.constant dense<0.000000e+00> : vector<8xf32>
    %5 = vector.multi_reduction <add>, %4, %cst [1] : vector<8x40xf32> to vector<8xf32>
    %6 = vector.shape_cast %5 : vector<8xf32> to vector<8x1xf32>
    %7 = vector.broadcast %6 : vector<8x1xf32> to vector<8x40xf32>
    %8 = arith.mulf %0, %7 : vector<8x40xf32>
    %9 = vector.broadcast %2 : vector<1x40xf32> to vector<8x40xf32>
    %10 = arith.addf %8, %9 : vector<8x40xf32>
    %11 = arith.addf %10, %0 : vector<8x40xf32>
    %c1 = arith.constant 1 : index
    %c0_5 = arith.constant 0 : index
    %12 = vector.load %arg2[%c1, %c0_5] : memref<3x40xf32, #tpu.memory_space<vmem>>, vector<1x40xf32>
    %c1_6 = arith.constant 1 : index
    %c0_7 = arith.constant 0 : index
    %13 = vector.load %arg3[%c1_6, %c0_7] : memref<3x40xf32, #tpu.memory_space<vmem>>, vector<1x40xf32>
    %14 = vector.broadcast %12 : vector<1x40xf32> to vector<8x40xf32>
    %15 = arith.mulf %11, %14 : vector<8x40xf32>
    %cst_8 = arith.constant dense<0.000000e+00> : vector<8xf32>
    %16 = vector.multi_reduction <add>, %15, %cst_8 [1] : vector<8x40xf32> to vector<8xf32>
    %17 = vector.shape_cast %16 : vector<8xf32> to vector<8x1xf32>
    %18 = vector.broadcast %17 : vector<8x1xf32> to vector<8x40xf32>
    %19 = arith.mulf %0, %18 : vector<8x40xf32>
    %20 = vector.broadcast %13 : vector<1x40xf32> to vector<8x40xf32>
    %21 = arith.addf %19, %20 : vector<8x40xf32>
    %22 = arith.addf %21, %11 : vector<8x40xf32>
    %c2 = arith.constant 2 : index
    %c0_9 = arith.constant 0 : index
    %23 = vector.load %arg2[%c2, %c0_9] : memref<3x40xf32, #tpu.memory_space<vmem>>, vector<1x40xf32>
    %c2_10 = arith.constant 2 : index
    %c0_11 = arith.constant 0 : index
    %24 = vector.load %arg3[%c2_10, %c0_11] : memref<3x40xf32, #tpu.memory_space<vmem>>, vector<1x40xf32>
    %25 = vector.broadcast %23 : vector<1x40xf32> to vector<8x40xf32>
    %26 = arith.mulf %22, %25 : vector<8x40xf32>
    %cst_12 = arith.constant dense<0.000000e+00> : vector<8xf32>
    %27 = vector.multi_reduction <add>, %26, %cst_12 [1] : vector<8x40xf32> to vector<8xf32>
    %28 = vector.shape_cast %27 : vector<8xf32> to vector<8x1xf32>
    %29 = vector.broadcast %28 : vector<8x1xf32> to vector<8x40xf32>
    %30 = arith.mulf %0, %29 : vector<8x40xf32>
    %31 = vector.broadcast %24 : vector<1x40xf32> to vector<8x40xf32>
    %32 = arith.addf %30, %31 : vector<8x40xf32>
    %33 = arith.addf %32, %22 : vector<8x40xf32>
    %34 = arith.truncf %0 : vector<8x40xf32> to vector<8x40xbf16>
    %c0_13 = arith.constant 0 : index
    %c0_14 = arith.constant 0 : index
    %35 = vector.load %arg4[%c0_13, %c0_14] : memref<40x256xbf16, #tpu.memory_space<vmem>>, vector<40x256xbf16>
    %cst_15 = arith.constant dense<0.000000e+00> : vector<8x256xf32>
    %36 = tpu.matmul %34, %35, %cst_15 {dimension_numbers = #tpu.dot_dimension_numbers<[1], [0], [0], [1], [0, 0, 1, 1], [], []>} : vector<8x40xbf16>, vector<40x256xbf16>, vector<8x256xf32> -> vector<8x256xf32>
    %c0_16 = arith.constant 0 : index
    %c0_17 = arith.constant 0 : index
    %37 = vector.load %arg5[%c0_16, %c0_17] : memref<1x256xf32, #tpu.memory_space<vmem>>, vector<1x256xf32>
    %38 = vector.broadcast %37 : vector<1x256xf32> to vector<8x256xf32>
    %39 = arith.addf %36, %38 : vector<8x256xf32>
    %cst_18 = arith.constant 0.000000e+00 : f32
    %40 = vector.broadcast %cst_18 : f32 to vector<8x256xf32>
    %41 = arith.maximumf %39, %40 : vector<8x256xf32>
    %cst_19 = arith.constant dense<0.000000e+00> : vector<8xf32>
    %42 = vector.multi_reduction <add>, %41, %cst_19 [1] : vector<8x256xf32> to vector<8xf32>
    %43 = vector.shape_cast %42 : vector<8xf32> to vector<8x1xf32>
    %44 = arith.mulf %41, %41 : vector<8x256xf32>
    %cst_20 = arith.constant dense<0.000000e+00> : vector<8xf32>
    %45 = vector.multi_reduction <add>, %44, %cst_20 [1] : vector<8x256xf32> to vector<8xf32>
    %46 = vector.shape_cast %45 : vector<8xf32> to vector<8x1xf32>
    %cst_21 = arith.constant 2.560000e+02 : f32
    %47 = vector.broadcast %cst_21 : f32 to vector<8x1xf32>
    %48 = arith.divf %43, %47 : vector<8x1xf32>
    %cst_22 = arith.constant 2.560000e+02 : f32
    %49 = vector.broadcast %cst_22 : f32 to vector<8x1xf32>
    %50 = arith.divf %46, %49 : vector<8x1xf32>
    %51 = arith.mulf %48, %48 : vector<8x1xf32>
    %52 = arith.subf %50, %51 : vector<8x1xf32>
    %cst_23 = arith.constant 0.000000e+00 : f32
    %53 = vector.broadcast %cst_23 : f32 to vector<8x1xf32>
    %54 = arith.maximumf %52, %53 : vector<8x1xf32>
    %cst_24 = arith.constant 9.99999974E-6 : f32
    %55 = vector.broadcast %cst_24 : f32 to vector<8x1xf32>
    %56 = arith.addf %54, %55 : vector<8x1xf32>
    %57 = math.rsqrt %56 : vector<8x1xf32>
    %58 = arith.truncf %41 : vector<8x256xf32> to vector<8x256xbf16>
    %c0_25 = arith.constant 0 : index
    %c0_26 = arith.constant 0 : index
    %59 = vector.load %arg6[%c0_25, %c0_26] : memref<256x128xbf16, #tpu.memory_space<vmem>>, vector<256x128xbf16>
    %cst_27 = arith.constant dense<0.000000e+00> : vector<8x128xf32>
    %60 = tpu.matmul %58, %59, %cst_27 {dimension_numbers = #tpu.dot_dimension_numbers<[1], [0], [0], [1], [0, 0, 1, 1], [], []>} : vector<8x256xbf16>, vector<256x128xbf16>, vector<8x128xf32> -> vector<8x128xf32>
    %c0_28 = arith.constant 0 : index
    %c0_29 = arith.constant 0 : index
    %61 = vector.load %arg8[%c0_28, %c0_29] : memref<1x128xf32, #tpu.memory_space<vmem>>, vector<1x128xf32>
    %62 = vector.broadcast %48 : vector<8x1xf32> to vector<8x128xf32>
    %63 = vector.broadcast %61 : vector<1x128xf32> to vector<8x128xf32>
    %64 = arith.mulf %62, %63 : vector<8x128xf32>
    %65 = arith.subf %60, %64 : vector<8x128xf32>
    %66 = vector.broadcast %57 : vector<8x1xf32> to vector<8x128xf32>
    %67 = arith.mulf %66, %65 : vector<8x128xf32>
    %c0_30 = arith.constant 0 : index
    %c0_31 = arith.constant 0 : index
    %68 = vector.load %arg7[%c0_30, %c0_31] : memref<1x128xf32, #tpu.memory_space<vmem>>, vector<1x128xf32>
    %69 = vector.broadcast %68 : vector<1x128xf32> to vector<8x128xf32>
    %70 = arith.addf %67, %69 : vector<8x128xf32>
    %cst_32 = arith.constant 0.000000e+00 : f32
    %71 = vector.broadcast %cst_32 : f32 to vector<8x128xf32>
    %72 = arith.maximumf %70, %71 : vector<8x128xf32>
    %cst_33 = arith.constant dense<0.000000e+00> : vector<8xf32>
    %73 = vector.multi_reduction <add>, %72, %cst_33 [1] : vector<8x128xf32> to vector<8xf32>
    %74 = vector.shape_cast %73 : vector<8xf32> to vector<8x1xf32>
    %75 = arith.mulf %72, %72 : vector<8x128xf32>
    %cst_34 = arith.constant dense<0.000000e+00> : vector<8xf32>
    %76 = vector.multi_reduction <add>, %75, %cst_34 [1] : vector<8x128xf32> to vector<8xf32>
    %77 = vector.shape_cast %76 : vector<8xf32> to vector<8x1xf32>
    %cst_35 = arith.constant 1.280000e+02 : f32
    %78 = vector.broadcast %cst_35 : f32 to vector<8x1xf32>
    %79 = arith.divf %74, %78 : vector<8x1xf32>
    %cst_36 = arith.constant 1.280000e+02 : f32
    %80 = vector.broadcast %cst_36 : f32 to vector<8x1xf32>
    %81 = arith.divf %77, %80 : vector<8x1xf32>
    %82 = arith.mulf %79, %79 : vector<8x1xf32>
    %83 = arith.subf %81, %82 : vector<8x1xf32>
    %cst_37 = arith.constant 0.000000e+00 : f32
    %84 = vector.broadcast %cst_37 : f32 to vector<8x1xf32>
    %85 = arith.maximumf %83, %84 : vector<8x1xf32>
    %cst_38 = arith.constant 9.99999974E-6 : f32
    %86 = vector.broadcast %cst_38 : f32 to vector<8x1xf32>
    %87 = arith.addf %85, %86 : vector<8x1xf32>
    %88 = math.rsqrt %87 : vector<8x1xf32>
    %89 = arith.truncf %72 : vector<8x128xf32> to vector<8x128xbf16>
    %c0_39 = arith.constant 0 : index
    %c0_40 = arith.constant 0 : index
    %90 = vector.load %arg9[%c0_39, %c0_40] : memref<128x64xbf16, #tpu.memory_space<vmem>>, vector<128x64xbf16>
    %cst_41 = arith.constant dense<0.000000e+00> : vector<8x64xf32>
    %91 = tpu.matmul %89, %90, %cst_41 {dimension_numbers = #tpu.dot_dimension_numbers<[1], [0], [0], [1], [0, 0, 1, 1], [], []>} : vector<8x128xbf16>, vector<128x64xbf16>, vector<8x64xf32> -> vector<8x64xf32>
    %c0_42 = arith.constant 0 : index
    %c0_43 = arith.constant 0 : index
    %92 = vector.load %arg11[%c0_42, %c0_43] : memref<1x64xf32, #tpu.memory_space<vmem>>, vector<1x64xf32>
    %93 = vector.broadcast %79 : vector<8x1xf32> to vector<8x64xf32>
    %94 = vector.broadcast %92 : vector<1x64xf32> to vector<8x64xf32>
    %95 = arith.mulf %93, %94 : vector<8x64xf32>
    %96 = arith.subf %91, %95 : vector<8x64xf32>
    %97 = vector.broadcast %88 : vector<8x1xf32> to vector<8x64xf32>
    %98 = arith.mulf %97, %96 : vector<8x64xf32>
    %c0_44 = arith.constant 0 : index
    %c0_45 = arith.constant 0 : index
    %99 = vector.load %arg10[%c0_44, %c0_45] : memref<1x64xf32, #tpu.memory_space<vmem>>, vector<1x64xf32>
    %100 = vector.broadcast %99 : vector<1x64xf32> to vector<8x64xf32>
    %101 = arith.addf %98, %100 : vector<8x64xf32>
    %cst_46 = arith.constant 0.000000e+00 : f32
    %102 = vector.broadcast %cst_46 : f32 to vector<8x64xf32>
    %103 = arith.maximumf %101, %102 : vector<8x64xf32>
    %cst_47 = arith.constant dense<0.000000e+00> : vector<8xf32>
    %104 = vector.multi_reduction <add>, %103, %cst_47 [1] : vector<8x64xf32> to vector<8xf32>
    %105 = vector.shape_cast %104 : vector<8xf32> to vector<8x1xf32>
    %106 = arith.mulf %103, %103 : vector<8x64xf32>
    %cst_48 = arith.constant dense<0.000000e+00> : vector<8xf32>
    %107 = vector.multi_reduction <add>, %106, %cst_48 [1] : vector<8x64xf32> to vector<8xf32>
    %108 = vector.shape_cast %107 : vector<8xf32> to vector<8x1xf32>
    %cst_49 = arith.constant 6.400000e+01 : f32
    %109 = vector.broadcast %cst_49 : f32 to vector<8x1xf32>
    %110 = arith.divf %105, %109 : vector<8x1xf32>
    %cst_50 = arith.constant 6.400000e+01 : f32
    %111 = vector.broadcast %cst_50 : f32 to vector<8x1xf32>
    %112 = arith.divf %108, %111 : vector<8x1xf32>
    %113 = arith.mulf %110, %110 : vector<8x1xf32>
    %114 = arith.subf %112, %113 : vector<8x1xf32>
    %cst_51 = arith.constant 0.000000e+00 : f32
    %115 = vector.broadcast %cst_51 : f32 to vector<8x1xf32>
    %116 = arith.maximumf %114, %115 : vector<8x1xf32>
    %cst_52 = arith.constant 9.99999974E-6 : f32
    %117 = vector.broadcast %cst_52 : f32 to vector<8x1xf32>
    %118 = arith.addf %116, %117 : vector<8x1xf32>
    %119 = math.rsqrt %118 : vector<8x1xf32>
    %120 = arith.truncf %103 : vector<8x64xf32> to vector<8x64xbf16>
    %c0_53 = arith.constant 0 : index
    %c0_54 = arith.constant 0 : index
    %121 = vector.load %arg12[%c0_53, %c0_54] : memref<64x32xbf16, #tpu.memory_space<vmem>>, vector<64x32xbf16>
    %cst_55 = arith.constant dense<0.000000e+00> : vector<8x32xf32>
    %122 = tpu.matmul %120, %121, %cst_55 {dimension_numbers = #tpu.dot_dimension_numbers<[1], [0], [0], [1], [0, 0, 1, 1], [], []>} : vector<8x64xbf16>, vector<64x32xbf16>, vector<8x32xf32> -> vector<8x32xf32>
    %c0_56 = arith.constant 0 : index
    %c0_57 = arith.constant 0 : index
    %123 = vector.load %arg14[%c0_56, %c0_57] : memref<1x32xf32, #tpu.memory_space<vmem>>, vector<1x32xf32>
    %124 = vector.broadcast %110 : vector<8x1xf32> to vector<8x32xf32>
    %125 = vector.broadcast %123 : vector<1x32xf32> to vector<8x32xf32>
    %126 = arith.mulf %124, %125 : vector<8x32xf32>
    %127 = arith.subf %122, %126 : vector<8x32xf32>
    %128 = vector.broadcast %119 : vector<8x1xf32> to vector<8x32xf32>
    %129 = arith.mulf %128, %127 : vector<8x32xf32>
    %c0_58 = arith.constant 0 : index
    %c0_59 = arith.constant 0 : index
    %130 = vector.load %arg13[%c0_58, %c0_59] : memref<1x32xf32, #tpu.memory_space<vmem>>, vector<1x32xf32>
    %131 = vector.broadcast %130 : vector<1x32xf32> to vector<8x32xf32>
    %132 = arith.addf %129, %131 : vector<8x32xf32>
    %cst_60 = arith.constant 0.000000e+00 : f32
    %133 = vector.broadcast %cst_60 : f32 to vector<8x32xf32>
    %134 = arith.maximumf %132, %133 : vector<8x32xf32>
    %cst_61 = arith.constant dense<0.000000e+00> : vector<8xf32>
    %135 = vector.multi_reduction <add>, %134, %cst_61 [1] : vector<8x32xf32> to vector<8xf32>
    %136 = vector.shape_cast %135 : vector<8xf32> to vector<8x1xf32>
    %137 = arith.mulf %134, %134 : vector<8x32xf32>
    %cst_62 = arith.constant dense<0.000000e+00> : vector<8xf32>
    %138 = vector.multi_reduction <add>, %137, %cst_62 [1] : vector<8x32xf32> to vector<8xf32>
    %139 = vector.shape_cast %138 : vector<8xf32> to vector<8x1xf32>
    %cst_63 = arith.constant 3.200000e+01 : f32
    %140 = vector.broadcast %cst_63 : f32 to vector<8x1xf32>
    %141 = arith.divf %136, %140 : vector<8x1xf32>
    %cst_64 = arith.constant 3.200000e+01 : f32
    %142 = vector.broadcast %cst_64 : f32 to vector<8x1xf32>
    %143 = arith.divf %139, %142 : vector<8x1xf32>
    %144 = arith.mulf %141, %141 : vector<8x1xf32>
    %145 = arith.subf %143, %144 : vector<8x1xf32>
    %cst_65 = arith.constant 0.000000e+00 : f32
    %146 = vector.broadcast %cst_65 : f32 to vector<8x1xf32>
    %147 = arith.maximumf %145, %146 : vector<8x1xf32>
    %cst_66 = arith.constant 9.99999974E-6 : f32
    %148 = vector.broadcast %cst_66 : f32 to vector<8x1xf32>
    %149 = arith.addf %147, %148 : vector<8x1xf32>
    %150 = math.rsqrt %149 : vector<8x1xf32>
    %151 = vector.broadcast %141 : vector<8x1xf32> to vector<8x32xf32>
    %152 = arith.subf %134, %151 : vector<8x32xf32>
    %153 = vector.broadcast %150 : vector<8x1xf32> to vector<8x32xf32>
    %154 = arith.mulf %152, %153 : vector<8x32xf32>
    %cst_67 = arith.constant dense<0.000000e+00> : vector<8xf32>
    %155 = vector.multi_reduction <add>, %33, %cst_67 [1] : vector<8x40xf32> to vector<8xf32>
    %156 = vector.shape_cast %155 : vector<8xf32> to vector<8x1xf32>
    %cst_68 = arith.constant dense<0.000000e+00> : vector<8xf32>
    %157 = vector.multi_reduction <add>, %154, %cst_68 [1] : vector<8x32xf32> to vector<8xf32>
    %158 = vector.shape_cast %157 : vector<8xf32> to vector<8x1xf32>
    %159 = arith.addf %156, %158 : vector<8x1xf32>
    %160 = arith.mulf %33, %33 : vector<8x40xf32>
    %cst_69 = arith.constant dense<0.000000e+00> : vector<8xf32>
    %161 = vector.multi_reduction <add>, %160, %cst_69 [1] : vector<8x40xf32> to vector<8xf32>
    %162 = vector.shape_cast %161 : vector<8xf32> to vector<8x1xf32>
    %163 = arith.mulf %154, %154 : vector<8x32xf32>
    %cst_70 = arith.constant dense<0.000000e+00> : vector<8xf32>
    %164 = vector.multi_reduction <add>, %163, %cst_70 [1] : vector<8x32xf32> to vector<8xf32>
    %165 = vector.shape_cast %164 : vector<8xf32> to vector<8x1xf32>
    %166 = arith.addf %162, %165 : vector<8x1xf32>
    %cst_71 = arith.constant 7.200000e+01 : f32
    %167 = vector.broadcast %cst_71 : f32 to vector<8x1xf32>
    %168 = arith.divf %159, %167 : vector<8x1xf32>
    %cst_72 = arith.constant 7.200000e+01 : f32
    %169 = vector.broadcast %cst_72 : f32 to vector<8x1xf32>
    %170 = arith.divf %166, %169 : vector<8x1xf32>
    %171 = arith.mulf %168, %168 : vector<8x1xf32>
    %172 = arith.subf %170, %171 : vector<8x1xf32>
    %cst_73 = arith.constant 0.000000e+00 : f32
    %173 = vector.broadcast %cst_73 : f32 to vector<8x1xf32>
    %174 = arith.maximumf %172, %173 : vector<8x1xf32>
    %cst_74 = arith.constant 9.99999974E-6 : f32
    %175 = vector.broadcast %cst_74 : f32 to vector<8x1xf32>
    %176 = arith.addf %174, %175 : vector<8x1xf32>
    %177 = math.rsqrt %176 : vector<8x1xf32>
    %c0_75 = arith.constant 0 : index
    %c0_76 = arith.constant 0 : index
    %178 = vector.load %arg15[%c0_75, %c0_76] : memref<1x40xf32, #tpu.memory_space<vmem>>, vector<1x40xf32>
    %179 = vector.broadcast %178 : vector<1x40xf32> to vector<8x40xf32>
    %180 = arith.mulf %33, %179 : vector<8x40xf32>
    %cst_77 = arith.constant dense<0.000000e+00> : vector<8xf32>
    %181 = vector.multi_reduction <add>, %180, %cst_77 [1] : vector<8x40xf32> to vector<8xf32>
    %182 = vector.shape_cast %181 : vector<8xf32> to vector<8x1xf32>
    %c0_78 = arith.constant 0 : index
    %c0_79 = arith.constant 0 : index
    %183 = vector.load %arg16[%c0_78, %c0_79] : memref<1x32xf32, #tpu.memory_space<vmem>>, vector<1x32xf32>
    %184 = vector.broadcast %183 : vector<1x32xf32> to vector<8x32xf32>
    %185 = arith.mulf %154, %184 : vector<8x32xf32>
    %cst_80 = arith.constant dense<0.000000e+00> : vector<8xf32>
    %186 = vector.multi_reduction <add>, %185, %cst_80 [1] : vector<8x32xf32> to vector<8xf32>
    %187 = vector.shape_cast %186 : vector<8xf32> to vector<8x1xf32>
    %188 = arith.addf %182, %187 : vector<8x1xf32>
    %c0_81 = arith.constant 0 : index
    %c0_82 = arith.constant 0 : index
    %189 = vector.load %arg17[%c0_81, %c0_82] : memref<1x1xf32, #tpu.memory_space<vmem>>, vector<1x1xf32>
    %190 = vector.broadcast %189 : vector<1x1xf32> to vector<8x1xf32>
    %191 = arith.mulf %168, %190 : vector<8x1xf32>
    %192 = arith.subf %188, %191 : vector<8x1xf32>
    %193 = arith.mulf %177, %192 : vector<8x1xf32>
    %c0_83 = arith.constant 0 : index
    %c0_84 = arith.constant 0 : index
    %194 = vector.load %arg18[%c0_83, %c0_84] : memref<1x1xf32, #tpu.memory_space<vmem>>, vector<1x1xf32>
    %195 = vector.broadcast %194 : vector<1x1xf32> to vector<8x1xf32>
    %196 = arith.addf %193, %195 : vector<8x1xf32>
    %c0_85 = arith.constant 0 : index
    %c0_86 = arith.constant 0 : index
    %197 = vector.load %arg19[%c0_85, %c0_86] : memref<8x1xf32, #tpu.memory_space<vmem>>, vector<8x1xf32>
    tpu.vector_store %arg19[%c0_85, %c0_86], %196 {strides = array<i32>} : memref<8x1xf32, #tpu.memory_space<vmem>>, vector<8x1xf32>,
    return
  }
  func.func @transform_0(%arg0: i32) -> (i32, i32) {
    %c0_i32 = arith.constant 0 : i32
    %c0_i32_0 = arith.constant 0 : i32
    return %arg0, %c0_i32 : i32, i32
  }
  func.func @transform_1(%arg0: i32) -> (i32, i32) {
    %c0_i32 = arith.constant 0 : i32
    %c0_i32_0 = arith.constant 0 : i32
    %c0_i32_1 = arith.constant 0 : i32
    return %c0_i32, %c0_i32_0 : i32, i32
  }
  func.func @transform_2(%arg0: i32) -> (i32, i32) {
    %c0_i32 = arith.constant 0 : i32
    %c0_i32_0 = arith.constant 0 : i32
    %c0_i32_1 = arith.constant 0 : i32
    return %c0_i32, %c0_i32_0 : i32, i32
  }
  func.func @transform_3(%arg0: i32) -> (i32, i32) {
    %c0_i32 = arith.constant 0 : i32
    %c0_i32_0 = arith.constant 0 : i32
    %c0_i32_1 = arith.constant 0 : i32
    return %c0_i32, %c0_i32_0 : i32, i32
  }
  func.func @transform_4(%arg0: i32) -> (i32, i32) {
    %c0_i32 = arith.constant 0 : i32
    %c0_i32_0 = arith.constant 0 : i32
    %c0_i32_1 = arith.constant 0 : i32
    return %c0_i32, %c0_i32_0 : i32, i32
  }
  func.func @transform_5(%arg0: i32) -> (i32, i32) {
    %c0_i32 = arith.constant 0 : i32
    %c0_i32_0 = arith.constant 0 : i32
    %c0_i32_1 = arith.constant 0 : i32
    return %c0_i32, %c0_i32_0 : i32, i32
  }
  func.func @transform_6(%arg0: i32) -> (i32, i32) {
    %c0_i32 = arith.constant 0 : i32
    %c0_i32_0 = arith.constant 0 : i32
    %c0_i32_1 = arith.constant 0 : i32
    return %c0_i32, %c0_i32_0 : i32, i32
  }
  func.func @transform_7(%arg0: i32) -> (i32, i32) {
    %c0_i32 = arith.constant 0 : i32
    %c0_i32_0 = arith.constant 0 : i32
    %c0_i32_1 = arith.constant 0 : i32
    return %c0_i32, %c0_i32_0 : i32, i32
  }
  func.func @transform_8(%arg0: i32) -> (i32, i32) {
    %c0_i32 = arith.constant 0 : i32
    %c0_i32_0 = arith.constant 0 : i32
    %c0_i32_1 = arith.constant 0 : i32
    return %c0_i32, %c0_i32_0 : i32, i32
  }
  func.func @transform_9(%arg0: i32) -> (i32, i32) {
    %c0_i32 = arith.constant 0 : i32
    %c0_i32_0 = arith.constant 0 : i32
    %c0_i32_1 = arith.constant 0 : i32
    return %c0_i32, %c0_i32_0 : i32, i32
  }
  func.func @transform_10(%arg0: i32) -> (i32, i32) {
    %c0_i32 = arith.constant 0 : i32
    %c0_i32_0 = arith.constant 0 : i32
    %c0_i32_1 = arith.constant 0 : i32
    return %c0_i32, %c0_i32_0 : i32, i32
  }
  func.func @transform_11(%arg0: i32) -> (i32, i32) {
    %c0_i32 = arith.constant 0 : i32
    %c0_i32_0 = arith.constant 0 : i32
    %c0_i32_1 = arith.constant 0 : i32
    return %c0_i32, %c0_i32_0 : i32, i32
  }
  func.func @transform_12(%arg0: i32) -> (i32, i32) {
    %c0_i32 = arith.constant 0 : i32
    %c0_i32_0 = arith.constant 0 : i32
    %c0_i32_1 = arith.constant 0 : i32
    return %c0_i32, %c0_i32_0 : i32, i32
  }
  func.func @transform_13(%arg0: i32) -> (i32, i32) {
    %c0_i32 = arith.constant 0 : i32
    %c0_i32_0 = arith.constant 0 : i32
    %c0_i32_1 = arith.constant 0 : i32
    return %c0_i32, %c0_i32_0 : i32, i32
  }
  func.func @transform_14(%arg0: i32) -> (i32, i32) {
    %c0_i32 = arith.constant 0 : i32
    %c0_i32_0 = arith.constant 0 : i32
    %c0_i32_1 = arith.constant 0 : i32
    return %c0_i32, %c0_i32_0 : i32, i32
  }
  func.func @transform_15(%arg0: i32) -> (i32, i32) {
    %c0_i32 = arith.constant 0 : i32
    %c0_i32_0 = arith.constant 0 : i32
    %c0_i32_1 = arith.constant 0 : i32
    return %c0_i32, %c0_i32_0 : i32, i32
  }
  func.func @transform_16(%arg0: i32) -> (i32, i32) {
    %c0_i32 = arith.constant 0 : i32
    %c0_i32_0 = arith.constant 0 : i32
    %c0_i32_1 = arith.constant 0 : i32
    return %c0_i32, %c0_i32_0 : i32, i32
  }
  func.func @transform_17(%arg0: i32) -> (i32, i32) {
    %c0_i32 = arith.constant 0 : i32
    %c0_i32_0 = arith.constant 0 : i32
    %c0_i32_1 = arith.constant 0 : i32
    return %c0_i32, %c0_i32_0 : i32, i32
  }
  func.func @transform_18(%arg0: i32) -> (i32, i32) {
    %c0_i32 = arith.constant 0 : i32
    %c0_i32_0 = arith.constant 0 : i32
    return %arg0, %c0_i32 : i32, i32
  }
}

</mosaic_0001>

<bundles_post_ra>
// kernel: tpu_custom_call.1
= control target key start
LH: loop header
LB: loop body
LE: loop exit
PB: predicated region body
PF: predicated region fallthrough
CT: control target
= control target key end

     0   :  { %s1228_s0 = inlined_call_operand.vmem [shape: f32[2,40], index: 0, kind: input, shape index: {}]   ;;  %s1229_s1 = inlined_call_operand.vmem [shape: f32[3,40], index: 1, kind: input, shape index: {}]   ;;  %s1230_s2 = inlined_call_operand.vmem [shape: f32[3,40], index: 2, kind: input, shape index: {}]   ;;  %s1231_s3 = inlined_call_operand.vmem [shape: bf16[40,256], index: 3, kind: input, shape index: {}]   ;;  %s1232_s4 = inlined_call_operand.vmem [shape: f32[1,256], index: 4, kind: input, shape index: {}]   ;;  %s1233_s5 = inlined_call_operand.hbm [shape: bf16[256,128], index: 5, kind: input, shape index: {}]   ;;  %s1234_s6 = inlined_call_operand.vmem [shape: f32[1,128], index: 6, kind: input, shape index: {}]   ;;  %s1235_s7 = inlined_call_operand.vmem [shape: f32[1,128], index: 7, kind: input, shape index: {}]   ;;  %s1236_s8 = inlined_call_operand.vmem [shape: bf16[128,64], index: 8, kind: input, shape index: {}]   ;;  %s1237_s9 = inlined_call_operand.vmem [shape: f32[1,64], index: 9, kind: input, shape index: {}]   ;;  %s1238_s10 = inlined_call_operand.vmem [shape: f32[1,64], index: 10, kind: input, shape index: {}]   ;;  %s1239_s11 = inlined_call_operand.vmem [shape: bf16[64,32], index: 11, kind: input, shape index: {}]   ;;  %s1240_s12 = inlined_call_operand.vmem [shape: f32[1,32], index: 12, kind: input, shape index: {}]   ;;  %s1241_s13 = inlined_call_operand.vmem [shape: f32[1,32], index: 13, kind: input, shape index: {}]   ;;  %s1242_s14 = inlined_call_operand.vmem [shape: f32[1,40], index: 14, kind: input, shape index: {}]   ;;  %s1243_s15 = inlined_call_operand.vmem [shape: f32[1,32], index: 15, kind: input, shape index: {}]   ;;  %s1244_s16 = inlined_call_operand.<no memory space> [shape: f32[1,1], index: 16, kind: input, shape index: {}]   ;;  %s1245_s18 = inlined_call_operand.vmem [shape: f32[2,1], index: 18, kind: output, shape index: {}]   ;;  %s1246_s17 = inlined_call_operand.<no memory space> [shape: f32[1,1], index: 17, kind: input, shape index: {}]  }
   0x1   :  { %1249 = sst [smem:[#allocation8_spill]] %s1228_s0  ;;  %v23_v0 = vstv %s1244_s16  ;;  %v25_v1 = vstv %s1246_s17 }
   0x2   :  { %1250 = sst [smem:[#allocation9_spill]] %s1229_s1  ;;  %24 = vst [vmem:[#allocation2] sm:$0x1] %v23_v0 }
   0x3   :  { %1251 = sst [smem:[#allocation10_spill]] %s1230_s2  ;;  %26 = vst [vmem:[#allocation3] sm:$0x1] %v25_v1 }
   0x4   :  { %27 = vsyncpa [#allocation5], 0  ;;  %s42_s1 = sshll.u32 %s1233_s5, 4  ;;  %s980_s20 = smov [#allocation4]   ;;  %s43_s1 = int_to_ptr.hbm [resolvable:$true] %s42_s1 }
   0x5   :  { %s44_s21 = sshll.u32 %s980_s20, 4  ;;  %s981_s22 = smov 64   ;;  %s45_s21 = int_to_ptr.vmem [resolvable:$true] %s44_s21 }
   0x6   :  { %s982_s2 = smov 4  }
   0x7   :  { %50 = dma.hbm_to_vmem [thread:$0]  %s43_s1, 2048, %s45_s21, [#allocation5], %s981_s22, %s981_s22, %s982_s2  }
   0x8   :  { %978 = dma.done.wait [#allocation5], 2048  }
   0x9   :  { %979 = vsyncadd [#allocation5], 4294965248  ;;  %v120_v2 = vld [vmem:[%s1231_s3 + $0x20] sm:$0xff]  ;;  %vm155_vm0 = vcmask 1043456   ;;  %v757_v5 = vld [vmem:[%s1231_s3 + $0x10] sm:$0xf] }
   0xa   :  { %v140_v3 = vunpack.c.l.b16 %v120_v2  ;;  %v141_v4 = vunpack.c.h.b16 %v120_v2  ;;  %v881_v6 = vld [vmem:[%s1231_s3 + $0x14] sm:$0xf0]  ;;  %v880_v7 = vld [vmem:[%s1231_s3 + $0x14] sm:$0xf]  ;;  %v759_v10 = vld [vmem:[%s1231_s3 + $0x18] sm:$0xf0] }
   0xb   :  { %v889_v11 = vld [vmem:[#allocation4 + $0x38] sm:$0xff]  ;;  %v888_v15 = vld [vmem:[#allocation4 + $0x30] sm:$0xff]  ;;  %v758_v17 = vor.u32 %v881_v6, %v757_v5  ;;  %v762_v18 = vor.u32 %v880_v7, %v759_v10  ;;  %v879_v20 = vld [vmem:[%s1231_s3 + $0x4] sm:$0xf0]  ;;  %s1252_s17 = sld [smem:[#allocation8_spill]]  ;;  %vm85_vm1 = vcmask 326656  }
   0xc   :  { %v146_v8 = vpack.c.b16 %v140_v3, %v140_v3  ;;  %v147_v9 = vpack.c.b16 %v141_v4, %v141_v4  ;;  %v897_v12 = vld [vmem:[#allocation4 + $0x78] sm:$0xff]  ;;  %351 = vmatpush.bf16.msra.mxu2 %v889_v11  ;;  %v896_v16 = vld [vmem:[#allocation4 + $0x70] sm:$0xff]  ;;  %v878_v21 = vld [vmem:[%s1231_s3 + $0x4] sm:$0xf]  ;;  %v983_v56 = vmov 256.0   ;;  %vm509_vm10 = vcmask 523264  }
   0xd   :  { %364 = vmatpush.bf16.msra.mxu3 %v897_v12  ;;  %v749_v19 = vld [vmem:[%s1231_s3] sm:$0xf]  ;;  %v751_v22 = vld [vmem:[%s1231_s3 + $0x8] sm:$0xf0]  ;;  %v884_v33 = vld [vmem:[#allocation4 + $0x10] sm:$0xff]  ;;  %934 = vrcp.f32 %v983_v56  ;;  %s1254_s20 = sld [smem:[#allocation10_spill]] }
   0xe   :  { %v157_v13 = vsel %vm155_vm0, %v146_v8, 0  ;;  %v160_v14 = vsel %vm155_vm0, %v147_v9, 0  ;;  %v887_v23 = vld [vmem:[#allocation4 + $0x28] sm:$0xff]  ;;  %v750_v26 = vor.u32 %v879_v20, %v749_v19  ;;  %v754_v27 = vor.u32 %v878_v21, %v751_v22  ;;  %v886_v29 = vld [vmem:[#allocation4 + $0x20] sm:$0xff]  ;;  %v885_v31 = vld [vmem:[#allocation4 + $0x18] sm:$0xff] }
   0xf   :  { %167 = vmatpush.bf16.msra.mxu0 %v157_v13  ;;  %180 = vmatpush.bf16.msra.mxu1 %v160_v14  ;;  %v895_v25 = vld [vmem:[#allocation4 + $0x68] sm:$0xff]  ;;  %v894_v30 = vld [vmem:[#allocation4 + $0x60] sm:$0xff]  ;;  %v893_v32 = vld [vmem:[#allocation4 + $0x58] sm:$0xff]  ;;  %vm602_vm15 = vcmask 261120  }
  0x10   :  { %352 = vmatpush.bf16.msra.mxu2 %v888_v15  ;;  %v892_v34 = vld [vmem:[#allocation4 + $0x50] sm:$0xff]  ;;  %v883_v35 = vld [vmem:[#allocation4 + $0x8] sm:$0xff]  ;;  %v882_v37 = vld [vmem:[#allocation4] sm:$0xff] }
  0x11   :  { %v1122_v24 = vld [vmem:[%s1252_s17] sm:$0xff]  ;;  %365 = vmatpush.bf16.msra.mxu3 %v896_v16  ;;  %v891_v36 = vld [vmem:[#allocation4 + $0x48] sm:$0xff]  ;;  %v905_v57 = vld [vmem:[%s1236_s8 + $0x38] sm:$0xff] }
  0x12   :  { %v115_v28 = vpack.c.bf16 %v1122_v24, %v1122_v24  ;;  %v890_v38 = vld [vmem:[#allocation4 + $0x40] sm:$0xff]  ;;  %v121_v39 = vld [vmem:[%s1232_s4] sm:$0x3]  ;;  %v904_v58 = vld [vmem:[%s1236_s8 + $0x30] sm:$0xff] }
  0x13   :  { %168 = vmatpush.bf16.msra.mxu0 %v758_v17  ;;  %181 = vmatpush.bf16.msra.mxu1 %v762_v18  ;;  %v123_v40 = vperm.slane %v121_v39, 0  ;;  %v124_v41 = vperm.slane %v121_v39, 1  ;;  %v935_v59 = vpop.eup %934  ;;  %v903_v61 = vld [vmem:[%s1236_s8 + $0x28] sm:$0xff]  ;;  %v902_v63 = vld [vmem:[%s1236_s8 + $0x20] sm:$0xff]  ;;  %v901_v1 = vld [vmem:[%s1236_s8 + $0x18] sm:$0xff] }
  0x14   :  { %353 = vmatpush.bf16.msra.mxu2 %v887_v23  ;;  %v199_v60 = vmul.f32 256.0, %v935_v59  ;;  %v900_v3 = vld [vmem:[%s1236_s8 + $0x10] sm:$0xff]  ;;  %vm203_vm2 = vweird.f32 %v935_v59  ;;  %v899_v6 = vld [vmem:[%s1236_s8 + $0x8] sm:$0xff]  ;;  %v898_v7 = vld [vmem:[%s1236_s8] sm:$0xff] }
  0x15   :  { %366 = vmatpush.bf16.msra.mxu3 %v895_v25  ;;  %v918_v22 = vld [vmem:[%s1235_s7] ss:$0 sm:$0xff] }
  0x16   :  { %v200_v62 = vsub.f32 1.0, %v199_v60 }
  0x17   :  { %169 = vmatpush.bf16.msra.mxu0 %v750_v26  ;;  %182 = vmatpush.bf16.msra.mxu1 %v754_v27 }
  0x18   :  { %354 = vmatpush.bf16.msra.mxu2 %v886_v29  ;;  %v201_v0 = vmul.f32 %v935_v59, %v200_v62 }
  0x19   :  { %367 = vmatpush.bf16.msra.mxu3 %v894_v30  ;;  %v919_v30 = vld [vmem:[%s1234_s6] ss:$0 sm:$0xff] }
  0x1a   :  { %763 = vmatmul.msk.bf16.vlgmr.msra.gmra.mxu0 %vm85_vm1, %v115_v28  ;;  %764 = vmatmul.msk.bf16.vlgmr.msra.gmra.mxu1 %vm85_vm1, %v115_v28  ;;  %v202_v2 = vadd.f32 %v935_v59, %v201_v0 }
  0x1b   :  { %483 = vmatpush.bf16.msrb.mxu0 %v905_v57 }
  0x1c   :  { %355 = vmatpush.bf16.msra.mxu2 %v885_v31  ;;  %v204_v5 = vsel %vm203_vm2, %v935_v59, %v202_v2 }
  0x1d   :  { %368 = vmatpush.bf16.msra.mxu3 %v893_v32 }
  0x1f   :  { %484 = vmatpush.bf16.msrb.mxu0 %v904_v58 }
  0x20   :  { %356 = vmatpush.bf16.msra.mxu2 %v884_v33 }
  0x21   :  { %369 = vmatpush.bf16.msra.mxu3 %v892_v34 }
  0x23   :  { %485 = vmatpush.bf16.msrb.mxu0 %v903_v61  ;;  %v920_v61 = vld [vmem:[%s1238_s10] ss:$0 sm:$0xff]  ;;  %s1253_s10 = sld [smem:[#allocation9_spill]] }
  0x24   :  { %357 = vmatpush.bf16.msra.mxu2 %v883_v35 }
  0x25   :  { %370 = vmatpush.bf16.msra.mxu3 %v891_v36 }
  0x27   :  { %486 = vmatpush.bf16.msrb.mxu0 %v902_v63 }
  0x28   :  { %358 = vmatpush.bf16.msra.mxu2 %v882_v37  ;;  %v984_v37 = vmov 128.0  }
  0x29   :  { %371 = vmatpush.bf16.msra.mxu3 %v890_v38 }
  0x2b   :  { %487 = vmatpush.bf16.msrb.mxu0 %v901_v1 }
  0x2f   :  { %488 = vmatpush.bf16.msrb.mxu0 %v900_v3  ;;  %v921_v3 = vld [vmem:[%s1237_s9] ss:$0 sm:$0xff] }
  0x33   :  { %489 = vmatpush.bf16.msrb.mxu0 %v899_v6 }
  0x37   :  { %490 = vmatpush.bf16.msrb.mxu0 %v898_v7 }
  0x97   :  { %v171_v42 = vpop.f32.mrf.mxu0  ;;  %v184_v43 = vpop.f32.mrf.mxu1 }
  0x98   :  { %v172_v44 = vadd.f32 %v171_v42, %v123_v40  ;;  %v185_v45 = vadd.f32 %v184_v43, %v124_v41  ;;  %v909_v42 = vld [vmem:[%s1239_s11 + $0x18] sm:$0xff] }
  0x99   :  { %580 = vmatpush.bf16.msrb.mxu1 %v909_v42 }
  0x9a   :  { %v188_v46 = vmax.f32 %v172_v44, 0.0  ;;  %v189_v47 = vmax.f32 %v185_v45, 0.0  ;;  %v908_v44 = vld [vmem:[%s1239_s11 + $0x10] sm:$0xff] }
  0x9c   :  { %v221_v48 = vpack.c.bf16 %v188_v46, %v188_v46  ;;  %v222_v49 = vpack.c.bf16 %v189_v47, %v189_v47  ;;  %v190_v50 = vadd.f32 %v189_v47, %v188_v46  ;;  %v193_v53 = vmul.f32 %v188_v46, %v188_v46 }
  0x9d   :  { %v194_v54 = vmul.f32 %v189_v47, %v189_v47  ;;  %581 = vmatpush.bf16.msrb.mxu1 %v908_v44  ;;  %v907_v47 = vld [vmem:[%s1239_s11 + $0x8] sm:$0xff]  ;;  %v924_v44 = vld [vmem:[%s1241_s13] ss:$0 sm:$0xff] }
  0x9e   :  { %359 = vmatmul.bf16.vlgmr.msra.gmra.mxu2 %v221_v48  ;;  %372 = vmatmul.bf16.vlgmr.msra.gmra.mxu3 %v222_v49  ;;  %v906_v49 = vld [vmem:[%s1239_s11] sm:$0xff] }
  0x9f   :  { %191 = vadd.xlane.f32.xlu0 %v190_v50  ;;  %v173_v51 = vpop.f32.mrf.mxu0  ;;  %v186_v52 = vpop.f32.mrf.mxu1  ;;  %v195_v55 = vadd.f32 %v194_v54, %v193_v53 }
  0xa1   :  { %582 = vmatpush.bf16.msrb.mxu1 %v907_v47 }
  0xa5   :  { %583 = vmatpush.bf16.msrb.mxu1 %v906_v49 }
  0xa7   :  { %196 = vadd.xlane.f32.xlu0 %v195_v55 }
 0x112   :  { %v192_v4 = vpop.xlane.xlu0 %191 }
 0x113   :  { %v205_v8 = vmul.f32 %v204_v5, %v192_v4 }
 0x115   :  { %v207_v10 = vmul.f32 %v205_v8, %v205_v8  ;;  %v381_v27 = vmul.f32 %v918_v22, %v205_v8  ;;  %v922_v8 = vld [vmem:[%s1253_s10] ss:$0 sm:$0xff] }
 0x11a   :  { %v197_v9 = vpop.xlane.xlu0 %196 }
 0x11b   :  { %v206_v11 = vmul.f32 %v204_v5, %v197_v9 }
 0x11d   :  { %v208_v12 = vsub.f32 %v206_v11, %v207_v10 }
 0x11f   :  { %v209_v13 = vmax.f32 %v208_v12, 0.0 }
 0x121   :  { %v210_v14 = vadd.f32 1e-05, %v209_v13  ;;  %v360_v15 = vpop.f32.mrf.mxu2  ;;  %v373_v16 = vpop.f32.mrf.mxu3  ;;  %v84_v13 = vmul.f32 %v922_v8, %v1122_v24 }
 0x122   :  { %v374_v25 = vadd.f32 %v373_v16, %v360_v15  ;;  %v985_v15 = vmov 64.0  }
 0x123   :  { %936 = vrsqrt.f32 %v210_v14  ;;  %vm217_vm4 = vweird.f32 %v210_v14 }
 0x124   :  { %v382_v29 = vsub.f32 %v374_v25, %v381_v27  ;;  %938 = vrcp.f32 %v984_v37 }
 0x129   :  { %v937_v17 = vpop.eup %936  ;;  %v362_v18 = vpop.f32.mrf.mxu2 }
 0x12a   :  { %v375_v19 = vpop.f32.mrf.mxu3  ;;  %v212_v20 = vmul.f32 %v937_v17, %v210_v14  ;;  %vm218_vm3 = vweird.f32 %v937_v17  ;;  %v939_v38 = vpop.eup %938  ;;  %v86_v14 = vsel %vm85_vm1, %v84_v13, 0.0 }
 0x12b   :  { %vm219_vm5 = vmor %vm217_vm4, %vm218_vm3  ;;  %v396_v39 = vmul.f32 128.0, %v939_v38  ;;  %vm400_vm6 = vweird.f32 %v939_v38 }
 0x12c   :  { %v213_v21 = vmul.f32 %v937_v17, %v212_v20 }
 0x12d   :  { %v397_v40 = vsub.f32 1.0, %v396_v39 }
 0x12e   :  { %v214_v23 = vmul.f32 0.5, %v213_v21 }
 0x12f   :  { %v398_v41 = vmul.f32 %v939_v38, %v397_v40 }
 0x130   :  { %v215_v26 = vsub.f32 1.5, %v214_v23 }
 0x131   :  { %v399_v43 = vadd.f32 %v939_v38, %v398_v41 }
 0x132   :  { %v216_v28 = vmul.f32 %v937_v17, %v215_v26 }
 0x133   :  { %v401_v46 = vsel %vm400_vm6, %v939_v38, %v399_v43 }
 0x134   :  { %v220_v31 = vsel %vm219_vm5, %v937_v17, %v216_v28 }
 0x135   :  { %v383_v32 = vmul.f32 %v382_v29, %v220_v31 }
 0x137   :  { %v388_v33 = vadd.f32 %v919_v30, %v383_v32  ;;  %v923_v30 = vld [vmem:[%s1254_s20] ss:$0 sm:$0xff] }
 0x139   :  { %v389_v34 = vmax.f32 %v388_v33, 0.0 }
 0x13b   :  { %390 = vadd.xlane.f32.xlu1 %v389_v34  ;;  %v418_v35 = vpack.c.bf16 %v389_v34, %v389_v34  ;;  %v392_v36 = vmul.f32 %v389_v34, %v389_v34 }
 0x13d   :  { %491 = vmatmul.bf16.vlgmr.msrb.gmra.mxu0 %v418_v35 }
 0x143   :  { %393 = vadd.xlane.f32.xlu1 %v392_v36  ;;  %v926_v36 = vld [vmem:[%s1253_s10 + $0x1] ss:$0 sm:$0xff] }
 0x1ae   :  { %v391_v45 = vpop.xlane.xlu1 %390 }
 0x1af   :  { %v402_v48 = vmul.f32 %v401_v46, %v391_v45 }
 0x1b1   :  { %v404_v51 = vmul.f32 %v402_v48, %v402_v48  ;;  %v500_v0 = vmul.f32 %v920_v61, %v402_v48 }
 0x1b6   :  { %v394_v50 = vpop.xlane.xlu1 %393 }
 0x1b7   :  { %v403_v52 = vmul.f32 %v401_v46, %v394_v50  ;;  %v925_v50 = vld [vmem:[%s1240_s12] ss:$0 sm:$0xff] }
 0x1b9   :  { %v405_v53 = vsub.f32 %v403_v52, %v404_v51 }
 0x1ba   :  { %v492_v54 = vpop.f32.mrf.mxu0 }
 0x1bb   :  { %v406_v55 = vmax.f32 %v405_v53, 0.0  ;;  %v501_v2 = vsub.f32 %v492_v54, %v500_v0 }
 0x1bd   :  { %v407_v56 = vadd.f32 1e-05, %v406_v55 }
 0x1bf   :  { %940 = vrsqrt.f32 %v407_v56  ;;  %vm414_vm8 = vweird.f32 %v407_v56 }
 0x1c0   :  { %942 = vrcp.f32 %v985_v15 }
 0x1c2   :  { %v494_v57 = vpop.f32.mrf.mxu0 }
 0x1c5   :  { %v941_v58 = vpop.eup %940 }
 0x1c6   :  { %v409_v59 = vmul.f32 %v941_v58, %v407_v56  ;;  %vm415_vm7 = vweird.f32 %v941_v58  ;;  %v943_v16 = vpop.eup %942 }
 0x1c7   :  { %vm416_vm9 = vmor %vm414_vm8, %vm415_vm7  ;;  %v518_v17 = vmul.f32 64.0, %v943_v16  ;;  %vm522_vm11 = vweird.f32 %v943_v16  ;;  %vm703_vm8 = vcmask 7168  }
 0x1c8   :  { %v410_v60 = vmul.f32 %v941_v58, %v409_v59 }
 0x1c9   :  { %v519_v18 = vsub.f32 1.0, %v518_v17 }
 0x1ca   :  { %v411_v62 = vmul.f32 0.5, %v410_v60  ;;  %v927_v60 = vld [vmem:[%s1254_s20 + $0x1] ss:$0 sm:$0xff] }
 0x1cb   :  { %v520_v19 = vmul.f32 %v943_v16, %v519_v18 }
 0x1cc   :  { %v412_v63 = vsub.f32 1.5, %v411_v62 }
 0x1cd   :  { %v521_v20 = vadd.f32 %v943_v16, %v520_v19 }
 0x1ce   :  { %v413_v1 = vmul.f32 %v941_v58, %v412_v63 }
 0x1cf   :  { %v523_v21 = vsel %vm522_vm11, %v943_v16, %v521_v20 }
 0x1d0   :  { %v417_v4 = vsel %vm416_vm9, %v941_v58, %v413_v1  ;;  %v986_v58 = vmov 32.0   ;;  %v928_v1 = vld [vmem:[%s1253_s10 + $0x2] ss:$0 sm:$0xff] }
 0x1d1   :  { %v502_v5 = vmul.f32 %v501_v2, %v417_v4 }
 0x1d3   :  { %v507_v6 = vadd.f32 %v921_v3, %v502_v5 }
 0x1d5   :  { %v508_v7 = vmax.f32 %v507_v6, 0.0 }
 0x1d7   :  { %v510_v9 = vsel %vm509_vm10, %v508_v7, 0.0  ;;  %v540_v10 = vpack.c.bf16 %v508_v7, %v508_v7  ;;  %v513_v11 = vmul.f32 %v508_v7, %v508_v7 }
 0x1d8   :  { %511 = vadd.xlane.f32.xlu2 %v510_v9 }
 0x1d9   :  { %877 = vmatmul.msk.bf16.vlgmr.msrb.gmra.mxu1 %vm509_vm10, %v540_v10  ;;  %v514_v12 = vsel %vm509_vm10, %v513_v11, 0.0 }
 0x1da   :  { %515 = vadd.xlane.f32.xlu0 %v514_v12 }
 0x1e0   :  { %87 = vadd.xlane.f32.xlu2 %v86_v14 }
 0x24b   :  { %v512_v22 = vpop.xlane.xlu2 %511 }
 0x24c   :  { %v524_v23 = vmul.f32 %v523_v21, %v512_v22 }
 0x24d   :  { %v516_v25 = vpop.xlane.xlu0 %515 }
 0x24e   :  { %v526_v26 = vmul.f32 %v524_v23, %v524_v23  ;;  %v525_v27 = vmul.f32 %v523_v21, %v516_v25  ;;  %v593_v47 = vmul.f32 %v924_v44, %v524_v23 }
 0x250   :  { %v527_v28 = vsub.f32 %v525_v27, %v526_v26 }
 0x252   :  { %v528_v29 = vmax.f32 %v527_v28, 0.0  ;;  %v929_v28 = vld [vmem:[%s1254_s20 + $0x2] ss:$0 sm:$0xff] }
 0x253   :  { %v88_v31 = vpop.xlane.xlu2 %87 }
 0x254   :  { %v529_v32 = vadd.f32 1e-05, %v528_v29  ;;  %v89_v33 = vmul.f32 %v88_v31, %v1122_v24 }
 0x256   :  { %944 = vrsqrt.f32 %v529_v32  ;;  %v91_v34 = vadd.f32 %v923_v30, %v89_v33  ;;  %v585_v35 = vpop.f32.mrf.mxu1  ;;  %vm536_vm13 = vweird.f32 %v529_v32 }
 0x257   :  { %v594_v49 = vsub.f32 %v585_v35, %v593_v47  ;;  %946 = vrcp.f32 %v986_v58 }
 0x258   :  { %v92_v37 = vadd.f32 %v91_v34, %v1122_v24 }
 0x25a   :  { %v96_v38 = vmul.f32 %v926_v36, %v92_v37 }
 0x25c   :  { %v945_v39 = vpop.eup %944  ;;  %v97_v40 = vsel %vm85_vm1, %v96_v38, 0.0 }
 0x25d   :  { %v531_v41 = vmul.f32 %v945_v39, %v529_v32  ;;  %98 = vadd.xlane.f32.xlu1 %v97_v40  ;;  %vm537_vm12 = vweird.f32 %v945_v39  ;;  %v947_v59 = vpop.eup %946  ;;  %v930_v32 = vld [vmem:[%s1242_s14] ss:$0 sm:$0xff] }
 0x25e   :  { %v587_v42 = vpop.f32.mrf.mxu1  ;;  %vm538_vm14 = vmor %vm536_vm13, %vm537_vm12  ;;  %v611_v62 = vmul.f32 32.0, %v947_v59  ;;  %vm615_vm0 = vweird.f32 %v947_v59 }
 0x25f   :  { %v532_v43 = vmul.f32 %v945_v39, %v531_v41 }
 0x260   :  { %v612_v2 = vsub.f32 1.0, %v611_v62 }
 0x261   :  { %v533_v45 = vmul.f32 0.5, %v532_v43  ;;  %v987_v43 = vmov 72.0  }
 0x262   :  { %v613_v5 = vmul.f32 %v947_v59, %v612_v2  ;;  %v932_v2 = vld [vmem:[#allocation2] ss:$0 sm:$0xff] }
 0x263   :  { %v534_v46 = vsub.f32 1.5, %v533_v45 }
 0x264   :  { %v614_v7 = vadd.f32 %v947_v59, %v613_v5 }
 0x265   :  { %v535_v48 = vmul.f32 %v945_v39, %v534_v46 }
 0x266   :  { %v616_v8 = vsel %vm615_vm0, %v947_v59, %v614_v7 }
 0x267   :  { %v539_v51 = vsel %vm538_vm14, %v945_v39, %v535_v48  ;;  %v931_v39 = vld [vmem:[%s1243_s15] ss:$0 sm:$0xff] }
 0x268   :  { %v595_v52 = vmul.f32 %v594_v49, %v539_v51 }
 0x26a   :  { %v600_v53 = vadd.f32 %v925_v50, %v595_v52 }
 0x26c   :  { %v601_v54 = vmax.f32 %v600_v53, 0.0 }
 0x26e   :  { %v603_v55 = vsel %vm602_vm15, %v601_v54, 0.0  ;;  %v606_v56 = vmul.f32 %v601_v54, %v601_v54 }
 0x26f   :  { %604 = vadd.xlane.f32.xlu2 %v603_v55 }
 0x270   :  { %v607_v57 = vsel %vm602_vm15, %v606_v56, 0.0 }
 0x271   :  { %608 = vadd.xlane.f32.xlu0 %v607_v57 }
 0x2d0   :  { %v99_v61 = vpop.xlane.xlu1 %98 }
 0x2d1   :  { %v100_v63 = vmul.f32 %v99_v61, %v1122_v24 }
 0x2d3   :  { %v102_v0 = vadd.f32 %v927_v60, %v100_v63 }
 0x2d5   :  { %v103_v3 = vadd.f32 %v102_v0, %v92_v37 }
 0x2d7   :  { %v107_v4 = vmul.f32 %v928_v1, %v103_v3 }
 0x2d9   :  { %v108_v6 = vsel %vm85_vm1, %v107_v4, 0.0 }
 0x2da   :  { %109 = vadd.xlane.f32.xlu1 %v108_v6 }
 0x2e2   :  { %v605_v9 = vpop.xlane.xlu2 %604 }
 0x2e3   :  { %v617_v10 = vmul.f32 %v616_v8, %v605_v9  ;;  %v933_v9 = vld [vmem:[#allocation3] ss:$0 sm:$0xff] }
 0x2e4   :  { %v609_v11 = vpop.xlane.xlu0 %608 }
 0x2e5   :  { %v619_v12 = vmul.f32 %v617_v10, %v617_v10  ;;  %v618_v13 = vmul.f32 %v616_v8, %v609_v11  ;;  %v633_v23 = vsub.f32 %v601_v54, %v617_v10 }
 0x2e7   :  { %v620_v14 = vsub.f32 %v618_v13, %v619_v12 }
 0x2e9   :  { %v621_v15 = vmax.f32 %v620_v14, 0.0 }
 0x2eb   :  { %v622_v16 = vadd.f32 1e-05, %v621_v15 }
 0x2ed   :  { %948 = vrsqrt.f32 %v622_v16  ;;  %vm629_vm3 = vweird.f32 %v622_v16 }
 0x2ee   :  { %950 = vrcp.f32 %v987_v43 }
 0x2f3   :  { %v949_v17 = vpop.eup %948 }
 0x2f4   :  { %v624_v18 = vmul.f32 %v949_v17, %v622_v16  ;;  %vm630_vm2 = vweird.f32 %v949_v17  ;;  %v951_v44 = vpop.eup %950 }
 0x2f5   :  { %vm631_vm4 = vmor %vm629_vm3, %vm630_vm2  ;;  %v652_v45 = vmul.f32 72.0, %v951_v44 }
 0x2f6   :  { %v625_v19 = vmul.f32 %v949_v17, %v624_v18 }
 0x2f7   :  { %v653_v46 = vsub.f32 1.0, %v652_v45 }
 0x2f8   :  { %v626_v20 = vmul.f32 0.5, %v625_v19 }
 0x2f9   :  { %v654_v47 = vmul.f32 %v951_v44, %v653_v46 }
 0x2fa   :  { %v627_v21 = vsub.f32 1.5, %v626_v20 }
 0x2fb   :  { %v655_v48 = vadd.f32 %v951_v44, %v654_v47 }
 0x2fc   :  { %v628_v22 = vmul.f32 %v949_v17, %v627_v21 }
 0x2fe   :  { %v632_v25 = vsel %vm631_vm4, %v949_v17, %v628_v22 }
 0x2ff   :  { %v634_v26 = vmul.f32 %v633_v23, %v632_v25 }
 0x301   :  { %v638_v27 = vsel %vm602_vm15, %v634_v26, 0.0  ;;  %v686_v40 = vmul.f32 %v931_v39, %v634_v26 }
 0x302   :  { %639 = vadd.xlane.f32.xlu0 %v638_v27 }
 0x303   :  { %v687_v42 = vsel %vm602_vm15, %v686_v40, 0.0 }
 0x34d   :  { %v110_v29 = vpop.xlane.xlu1 %109 }
 0x34e   :  { %v111_v30 = vmul.f32 %v110_v29, %v1122_v24  ;;  %v646_v24 = vmul.f32 %v634_v26, %v634_v26 }
 0x350   :  { %v113_v31 = vadd.f32 %v929_v28, %v111_v30  ;;  %v647_v41 = vsel %vm602_vm15, %v646_v24, 0.0 }
 0x352   :  { %v114_v33 = vadd.f32 %v113_v31, %v103_v3 }
 0x354   :  { %v635_v34 = vsel %vm85_vm1, %v114_v33, 0.0  ;;  %v642_v35 = vmul.f32 %v114_v33, %v114_v33  ;;  %v678_v36 = vmul.f32 %v930_v32, %v114_v33 }
 0x355   :  { %636 = vadd.xlane.f32.xlu2 %v635_v34 }
 0x356   :  { %v643_v37 = vsel %vm85_vm1, %v642_v35, 0.0  ;;  %v679_v38 = vsel %vm85_vm1, %v678_v36, 0.0  ;;  %vm656_vm1 = vweird.f32 %v951_v44 }
 0x357   :  { %644 = vadd.xlane.f32.xlu1 %v643_v37  ;;  %680 = vadd.xlane.f32.xlu0 %v679_v38  ;;  %v657_v52 = vsel %vm656_vm1, %v951_v44, %v655_v48 }
 0x35d   :  { %648 = vadd.xlane.f32.xlu2 %v647_v41 }
 0x35f   :  { %688 = vadd.xlane.f32.xlu1 %v687_v42 }
 0x375   :  { %v640_v50 = vpop.xlane.xlu0 %639 }
 0x3c8   :  { %v637_v49 = vpop.xlane.xlu2 %636 }
 0x3c9   :  { %v641_v51 = vadd.f32 %v640_v50, %v637_v49 }
 0x3ca   :  { %v645_v54 = vpop.xlane.xlu1 %644  ;;  %v681_v3 = vpop.xlane.xlu0 %680 }
 0x3cb   :  { %v658_v53 = vmul.f32 %v657_v52, %v641_v51 }
 0x3cd   :  { %v660_v57 = vmul.f32 %v658_v53, %v658_v53  ;;  %v695_v7 = vmul.f32 %v932_v2, %v658_v53 }
 0x3d0   :  { %v649_v55 = vpop.xlane.xlu2 %648 }
 0x3d1   :  { %v650_v56 = vadd.f32 %v649_v55, %v645_v54 }
 0x3d2   :  { %v689_v1 = vpop.xlane.xlu1 %688 }
 0x3d3   :  { %v659_v58 = vmul.f32 %v657_v52, %v650_v56  ;;  %v690_v5 = vadd.f32 %v689_v1, %v681_v3 }
 0x3d5   :  { %v661_v59 = vsub.f32 %v659_v58, %v660_v57  ;;  %v696_v10 = vsub.f32 %v690_v5, %v695_v7 }
 0x3d7   :  { %v662_v60 = vmax.f32 %v661_v59, 0.0 }
 0x3d9   :  { %v663_v61 = vadd.f32 1e-05, %v662_v60 }
 0x3db   :  { %952 = vrsqrt.f32 %v663_v61  ;;  %vm670_vm6 = vweird.f32 %v663_v61 }
 0x3e1   :  { %v953_v62 = vpop.eup %952 }
 0x3e2   :  { %v665_v63 = vmul.f32 %v953_v62, %v663_v61  ;;  %vm671_vm5 = vweird.f32 %v953_v62 }
 0x3e3   :  { %vm672_vm7 = vmor %vm670_vm6, %vm671_vm5 }
 0x3e4   :  { %v666_v0 = vmul.f32 %v953_v62, %v665_v63 }
 0x3e6   :  { %v667_v4 = vmul.f32 0.5, %v666_v0 }
 0x3e8   :  { %v668_v6 = vsub.f32 1.5, %v667_v4 }
 0x3ea   :  { %v669_v8 = vmul.f32 %v953_v62, %v668_v6 }
 0x3ec   :  { %v673_v11 = vsel %vm672_vm7, %v953_v62, %v669_v8 }
 0x3ed   :  { %v697_v12 = vmul.f32 %v696_v10, %v673_v11 }
 0x3ef   :  { %v702_v13 = vadd.f32 %v933_v9, %v697_v12 }
 0x3f1   :  { %704 = vst.msk [vmem:[#allocation6] sm:$0xff] %vm703_vm8, %v702_v13 }
 0x3f8   :  { %v723_v14 = vld [vmem:[#allocation6] sm:$0x3] }
 0x3f9   :  { %724 = vst [vmem:[%s1245_s18] sm:$0x3] %v723_v14 }
 0x3fa   :  { %742 = vsyncpa [#allocation5], 1 }

</bundles_post_ra>
